<compile_context>
chip_gen: v7x
topology: tpu7x:2x2x1
jax: 0.10.0
libtpu: 0.0.40
codegen_flags: <defaults>
</compile_context>

<pallas_src>
import jax
import jax.numpy as jnp
from jax.experimental import pallas as pl
from jax.experimental.pallas import tpu as pltpu

_EPS = 1e-5

_COMPILER_PARAMS = pltpu.CompilerParams(
    # Every grid step owns its output blocks -> fully parallel (v7x megacore).
    dimension_semantics=("parallel",),
    # Tiles are sized for double-buffering well inside v7x's 64 MiB physical
    # VMEM; raise the scoped limit explicitly (v5e default is only 16 MiB).
    vmem_limit_bytes=32 * 1024 * 1024,
)


def _write_stats(y, stats_ref):
    """Per-tile BatchNorm partials: packed-lane sum and sum-of-squares."""
    s = jnp.sum(y, axis=0, keepdims=True)
    q = jnp.sum(y * y, axis=0, keepdims=True)
    stats_ref[...] = jnp.concatenate([s, q], axis=0)[None]


def _conv_stats_kernel(x_ref, w_ref, b_ref, y_ref, stats_ref):
    """1x1 conv (block-diagonal matmul) + bias; emit BN partial sums."""
    y = jnp.dot(x_ref[...], w_ref[...],
                preferred_element_type=jnp.float32) + b_ref[...]
    y_ref[...] = y
    _write_stats(y, stats_ref)


def _norm_conv_stats_kernel(x_ref, s_ref, t_ref, w_ref, b_ref, y_ref, stats_ref):
    """BN affine + relu, then 1x1 conv + bias; emit BN partial sums."""
    hn = jnp.maximum(x_ref[...] * s_ref[...] + t_ref[...], 0.0)
    y = jnp.dot(hn, w_ref[...],
                preferred_element_type=jnp.float32) + b_ref[...]
    y_ref[...] = y
    _write_stats(y, stats_ref)


def _pixelconv_stats_kernel(x_ref, s_ref, t_ref, w_ref, b_ref, y_ref, stats_ref):
    """BN1 affine + relu, then masked 3x3 'B' conv as ONE matmul; BN2 partials.

    The block is one full image in (H, W*Ch) packed layout.  Column shifts and
    their zero padding live in the weight (shift matrices built in the
    wrapper), so only one row shift (for the y-1 taps) remains in-kernel.
    """
    hrows, wch = x_ref.shape
    hn = jnp.maximum(x_ref[...] * s_ref[...] + t_ref[...], 0.0)
    up = jnp.concatenate(
        [jnp.zeros((1, wch), jnp.float32), hn[:hrows - 1, :]], axis=0)
    patches = jnp.concatenate([up, hn], axis=1)          # (H, 2*W*Ch)
    y = jnp.dot(patches, w_ref[...],
                preferred_element_type=jnp.float32) + b_ref[...]
    y_ref[...] = y
    _write_stats(y, stats_ref)


def _residual_finalize_kernel(x_ref, h3_ref, s_ref, t_ref, out_ref):
    """out = x + relu(bn3(h3_pre)); residual read deferred to this pass."""
    out_ref[...] = x_ref[...] + jnp.maximum(
        h3_ref[...] * s_ref[...] + t_ref[...], 0.0)


def _bn_affine(stats, gamma, beta, w_rep, count):
    """Two-phase BN finalize: partial sums -> per-channel scale/shift, packed
    back to the (W*C) lane layout (lane = x*C + c)."""
    tot = jnp.sum(stats, axis=0)                      # (2, w_rep * C)
    tot = tot.reshape(2, w_rep, -1).sum(axis=1)       # (2, C)
    mean = tot[0] / count
    var = jnp.maximum(tot[1] / count - mean * mean, 0.0)   # biased variance
    scale = gamma * jax.lax.rsqrt(var + _EPS)
    shift = beta - mean * scale
    return jnp.tile(scale, w_rep)[None, :], jnp.tile(shift, w_rep)[None, :]


def residual_block(x_nchw, params, *, tile_rows=8):
    """ResidualBlock forward.  x_nchw: (N, C, H, W) float32."""
    n, c, h, w = x_nchw.shape
    ch = c // 2
    wc, wch = w * c, w * ch
    rows = n * h
    assert rows % tile_rows == 0 and tile_rows % 8 == 0
    assert h % 8 == 0
    nt = rows // tile_rows
    count = n * h * w                                  # BN reduction count

    (w1, b1, g1, be1, wp, bp, g2, be2, w2, b2, g3, be3) = params
    f32 = jnp.float32

    # ---- lane-dense packing: rows = (n, y), lanes = x*C + c --------------
    xp = jnp.transpose(x_nchw, (0, 2, 3, 1)).reshape(rows, wc)

    eye_w = jnp.eye(w, dtype=f32)
    sh_m1 = jnp.eye(w, k=1, dtype=f32)     # output pixel x gathers input x-1
    sh_p1 = jnp.eye(w, k=-1, dtype=f32)    # output pixel x gathers input x+1
    w1b = jnp.kron(eye_w, w1)              # (wc, wch)  block-diagonal 1x1 conv
    w2b = jnp.kron(eye_w, w2)              # (wch, wc)
    # Masked 3x3 'B' conv taps: row y-1 -> (0,0),(0,1),(0,2); row y -> (1,0),(1,1).
    w_up = (jnp.kron(sh_m1, wp[0, 0]) + jnp.kron(eye_w, wp[0, 1])
            + jnp.kron(sh_p1, wp[0, 2]))
    w_cur = jnp.kron(sh_m1, wp[1, 0]) + jnp.kron(eye_w, wp[1, 1])
    wpix = jnp.concatenate([w_up, w_cur], axis=0)      # (2*wch, wch)
    b1p = jnp.tile(b1, w)[None, :]
    bpp = jnp.tile(bp, w)[None, :]
    b2p = jnp.tile(b2, w)[None, :]

    row_in = lambda i: (i, 0)
    bcast = lambda i: (0, 0)

    # ---- pass 1: conv1 (1x1, C -> C/2) + BN1 partial sums ----------------
    h1_pre, stats1 = pl.pallas_call(
        _conv_stats_kernel,
        out_shape=(jax.ShapeDtypeStruct((rows, wch), f32),
                   jax.ShapeDtypeStruct((nt, 2, wch), f32)),
        grid=(nt,),
        in_specs=[pl.BlockSpec((tile_rows, wc), row_in),
                  pl.BlockSpec((wc, wch), bcast),
                  pl.BlockSpec((1, wch), bcast)],
        out_specs=(pl.BlockSpec((tile_rows, wch), row_in),
                   pl.BlockSpec((1, 2, wch), lambda i: (i, 0, 0))),
        compiler_params=_COMPILER_PARAMS,
    )(xp, w1b, b1p)
    s1, t1 = _bn_affine(stats1, g1, be1, w, count)

    # ---- pass 2: bn1 + relu, masked 3x3 'B' conv, BN2 partials -----------
    # One image per grid step so the y-1 row stays in-block (no halo DMA).
    # TODO(synk): for very large H*W, tile over H with a one-row halo block.
    h2_pre, stats2 = pl.pallas_call(
        _pixelconv_stats_kernel,
        out_shape=(jax.ShapeDtypeStruct((rows, wch), f32),
                   jax.ShapeDtypeStruct((n, 2, wch), f32)),
        grid=(n,),
        in_specs=[pl.BlockSpec((h, wch), row_in),
                  pl.BlockSpec((1, wch), bcast),
                  pl.BlockSpec((1, wch), bcast),
                  pl.BlockSpec((2 * wch, wch), bcast),
                  pl.BlockSpec((1, wch), bcast)],
        out_specs=(pl.BlockSpec((h, wch), row_in),
                   pl.BlockSpec((1, 2, wch), lambda i: (i, 0, 0))),
        compiler_params=_COMPILER_PARAMS,
    )(h1_pre, s1, t1, wpix, bpp)
    s2, t2 = _bn_affine(stats2, g2, be2, w, count)

    # ---- pass 3: bn2 + relu, conv2 (1x1, C/2 -> C), BN3 partials ---------
    h3_pre, stats3 = pl.pallas_call(
        _norm_conv_stats_kernel,
        out_shape=(jax.ShapeDtypeStruct((rows, wc), f32),
                   jax.ShapeDtypeStruct((nt, 2, wc), f32)),
        grid=(nt,),
        in_specs=[pl.BlockSpec((tile_rows, wch), row_in),
                  pl.BlockSpec((1, wch), bcast),
                  pl.BlockSpec((1, wch), bcast),
                  pl.BlockSpec((wch, wc), bcast),
                  pl.BlockSpec((1, wc), bcast)],
        out_specs=(pl.BlockSpec((tile_rows, wc), row_in),
                   pl.BlockSpec((1, 2, wc), lambda i: (i, 0, 0))),
        compiler_params=_COMPILER_PARAMS,
    )(h2_pre, s2, t2, w2b, b2p)
    s3, t3 = _bn_affine(stats3, g3, be3, w, count)

    # ---- pass 4: bn3 + relu + residual add (full 128-lane stores) --------
    out_p = pl.pallas_call(
        _residual_finalize_kernel,
        out_shape=jax.ShapeDtypeStruct((rows, wc), f32),
        grid=(nt,),
        in_specs=[pl.BlockSpec((tile_rows, wc), row_in),
                  pl.BlockSpec((tile_rows, wc), row_in),
                  pl.BlockSpec((1, wc), bcast),
                  pl.BlockSpec((1, wc), bcast)],
        out_specs=pl.BlockSpec((tile_rows, wc), row_in),
        compiler_params=_COMPILER_PARAMS,
    )(xp, h3_pre, s3, t3)

    return jnp.transpose(out_p.reshape(n, h, w, c), (0, 3, 1, 2))


def init_params(key, c):
    """Deterministic synthetic parameters (kernel-friendly layouts)."""
    ch = c // 2
    ks = jax.random.split(key, 12)
    sc = 0.1
    w1 = sc * jax.random.normal(ks[0], (c, ch), jnp.float32)        # conv1
    b1 = sc * jax.random.normal(ks[1], (ch,), jnp.float32)
    g1 = 1.0 + sc * jax.random.normal(ks[2], (ch,), jnp.float32)    # bn1
    be1 = sc * jax.random.normal(ks[3], (ch,), jnp.float32)
    wp = sc * jax.random.normal(ks[4], (3, 3, ch, ch), jnp.float32)  # pixelconv
    # PixelConvLayer 'B' mask: zero tap (1, 2) and the whole bottom row (2, :).
    mask = jnp.ones((3, 3, 1, 1), jnp.float32)
    mask = mask.at[1, 2].set(0.0)
    mask = mask.at[2, :].set(0.0)
    wp = wp * mask
    bp = sc * jax.random.normal(ks[5], (ch,), jnp.float32)
    g2 = 1.0 + sc * jax.random.normal(ks[6], (ch,), jnp.float32)    # bn2
    be2 = sc * jax.random.normal(ks[7], (ch,), jnp.float32)
    w2 = sc * jax.random.normal(ks[8], (ch, c), jnp.float32)        # conv2
    b2 = sc * jax.random.normal(ks[9], (c,), jnp.float32)
    g3 = 1.0 + sc * jax.random.normal(ks[10], (c,), jnp.float32)    # bn3
    be3 = sc * jax.random.normal(ks[11], (c,), jnp.float32)
    return (w1, b1, g1, be1, wp, bp, g2, be2, w2, b2, g3, be3)


def reference(x_nchw, params):
    """Pure-JAX reference of the ResidualBlock forward (training-mode BN)."""
    w1, b1, g1, be1, wp, bp, g2, be2, w2, b2, g3, be3 = params
    x = jnp.transpose(x_nchw, (0, 2, 3, 1)).astype(jnp.float32)  # NHWC
    n, h, w, c = x.shape

    def bn_relu(t, g, b):
        m = jnp.mean(t, axis=(0, 1, 2), keepdims=True)
        v = jnp.mean((t - m) ** 2, axis=(0, 1, 2), keepdims=True)
        y = (t - m) / jnp.sqrt(v + _EPS) * g.reshape(1, 1, 1, -1) + b.reshape(1, 1, 1, -1)
        return jnp.maximum(y, 0.0)

    h1 = jnp.einsum('nhwc,cd->nhwd', x, w1) + b1.reshape(1, 1, 1, -1)
    h1 = bn_relu(h1, g1, be1)
    hp = jnp.pad(h1, ((0, 0), (1, 1), (1, 1), (0, 0)))
    acc = jnp.zeros_like(h1)
    for ky in range(3):
        for kx in range(3):
            acc = acc + jnp.einsum('nhwc,cd->nhwd',
                                   hp[:, ky:ky + h, kx:kx + w, :], wp[ky, kx])
    h2 = bn_relu(acc + bp.reshape(1, 1, 1, -1), g2, be2)
    h3 = jnp.einsum('nhwc,cd->nhwd', h2, w2) + b2.reshape(1, 1, 1, -1)
    h3 = bn_relu(h3, g3, be3)
    return jnp.transpose(x + h3, (0, 3, 1, 2))


if __name__ == "__main__":
    key = jax.random.PRNGKey(0)
    kx, kp = jax.random.split(key)
    n, c, h, w = 2, 8, 16, 16
    x = jax.random.normal(kx, (n, c, h, w), jnp.float32)   # NCHW like PyTorch
    params = init_params(kp, c)

    fwd = jax.jit(residual_block)
    out = jax.block_until_ready(fwd(x, params))

    ref = reference(x, params)
    assert out.shape == x.shape and out.dtype == jnp.float32
    err = float(jnp.max(jnp.abs(out - ref)))
    assert jnp.allclose(out, ref, rtol=1e-3, atol=1e-3), f"max abs err {err}"

    print("KERNEL_OK")
</pallas_src>

<mosaic_0001>
module attributes {stable_mosaic.version = 11 : i64} {
  func.func @_conv_stats_kernel(%arg0: i32, %arg1: memref<8x128xf32, #tpu.memory_space<vmem>>, %arg2: memref<128x64xf32, #tpu.memory_space<vmem>>, %arg3: memref<1x64xf32, #tpu.memory_space<vmem>>, %arg4: memref<8x64xf32, #tpu.memory_space<vmem>>, %arg5: memref<1x2x64xf32, #tpu.memory_space<vmem>>) attributes {dimension_semantics = [#tpu.dimension_semantics<parallel>], iteration_bounds = array<i64: 4>, scalar_prefetch = 0 : i64, scratch_operands = 0 : i64, tpu.core_type = #tpu.core_type<tc>, window_params = [{transform_indices = @transform_0, window_bounds = array<i64: 8, 128>}, {pipeline_mode = #tpu.pipeline_mode<synchronous>, transform_indices = @transform_1, window_bounds = array<i64: 128, 64>}, {pipeline_mode = #tpu.pipeline_mode<synchronous>, transform_indices = @transform_2, window_bounds = array<i64: 1, 64>}, {transform_indices = @transform_3, window_bounds = array<i64: 8, 64>}, {transform_indices = @transform_4, window_bounds = array<i64: 1, 2, 64>}]} {
    %c0 = arith.constant 0 : index
    %c0_0 = arith.constant 0 : index
    %0 = vector.load %arg1[%c0, %c0_0] : memref<8x128xf32, #tpu.memory_space<vmem>>, vector<8x128xf32>
    %c0_1 = arith.constant 0 : index
    %c0_2 = arith.constant 0 : index
    %1 = vector.load %arg2[%c0_1, %c0_2] : memref<128x64xf32, #tpu.memory_space<vmem>>, vector<128x64xf32>
    %cst = arith.constant dense<0.000000e+00> : vector<8x64xf32>
    %2 = tpu.matmul %0, %1, %cst {dimension_numbers = #tpu.dot_dimension_numbers<[1], [0], [0], [1], [0, 0, 1, 1], [], []>} : vector<8x128xf32>, vector<128x64xf32>, vector<8x64xf32> -> vector<8x64xf32>
    %c0_3 = arith.constant 0 : index
    %c0_4 = arith.constant 0 : index
    %3 = vector.load %arg3[%c0_3, %c0_4] : memref<1x64xf32, #tpu.memory_space<vmem>>, vector<1x64xf32>
    %4 = vector.broadcast %3 : vector<1x64xf32> to vector<8x64xf32>
    %5 = arith.addf %2, %4 : vector<8x64xf32>
    %c0_5 = arith.constant 0 : index
    %c0_6 = arith.constant 0 : index
    %6 = vector.load %arg4[%c0_5, %c0_6] : memref<8x64xf32, #tpu.memory_space<vmem>>, vector<8x64xf32>
    tpu.vector_store %arg4[%c0_5, %c0_6], %5 {strides = array<i32>} : memref<8x64xf32, #tpu.memory_space<vmem>>, vector<8x64xf32>,
    %cst_7 = arith.constant dense<0.000000e+00> : vector<64xf32>
    %7 = vector.multi_reduction <add>, %5, %cst_7 [0] : vector<8x64xf32> to vector<64xf32>
    %8 = vector.shape_cast %7 : vector<64xf32> to vector<1x64xf32>
    %9 = arith.mulf %5, %5 : vector<8x64xf32>
    %cst_8 = arith.constant dense<0.000000e+00> : vector<64xf32>
    %10 = vector.multi_reduction <add>, %9, %cst_8 [0] : vector<8x64xf32> to vector<64xf32>
    %11 = vector.shape_cast %10 : vector<64xf32> to vector<1x64xf32>
    %12 = tpu.concatenate %8, %11 in 0 : vector<1x64xf32>, vector<1x64xf32> -> vector<2x64xf32>
    %13 = vector.shape_cast %12 : vector<2x64xf32> to vector<1x2x64xf32>
    %c0_9 = arith.constant 0 : index
    %c0_10 = arith.constant 0 : index
    %c0_11 = arith.constant 0 : index
    %14 = vector.load %arg5[%c0_9, %c0_10, %c0_11] : memref<1x2x64xf32, #tpu.memory_space<vmem>>, vector<1x2x64xf32>
    tpu.vector_store %arg5[%c0_9, %c0_10, %c0_11], %13 {strides = array<i32>} : memref<1x2x64xf32, #tpu.memory_space<vmem>>, vector<1x2x64xf32>,
    return
  }
  func.func @transform_0(%arg0: i32) -> (i32, i32) {
    %c0_i32 = arith.constant 0 : i32
    %c0_i32_0 = arith.constant 0 : i32
    return %arg0, %c0_i32 : i32, i32
  }
  func.func @transform_1(%arg0: i32) -> (i32, i32) {
    %c0_i32 = arith.constant 0 : i32
    %c0_i32_0 = arith.constant 0 : i32
    %c0_i32_1 = arith.constant 0 : i32
    return %c0_i32, %c0_i32_0 : i32, i32
  }
  func.func @transform_2(%arg0: i32) -> (i32, i32) {
    %c0_i32 = arith.constant 0 : i32
    %c0_i32_0 = arith.constant 0 : i32
    %c0_i32_1 = arith.constant 0 : i32
    return %c0_i32, %c0_i32_0 : i32, i32
  }
  func.func @transform_3(%arg0: i32) -> (i32, i32) {
    %c0_i32 = arith.constant 0 : i32
    %c0_i32_0 = arith.constant 0 : i32
    return %arg0, %c0_i32 : i32, i32
  }
  func.func @transform_4(%arg0: i32) -> (i32, i32, i32) {
    %c0_i32 = arith.constant 0 : i32
    %c0_i32_0 = arith.constant 0 : i32
    %c0_i32_1 = arith.constant 0 : i32
    return %arg0, %c0_i32, %c0_i32_0 : i32, i32, i32
  }
}

module attributes {stable_mosaic.version = 11 : i64} {
  func.func @_pixelconv_stats_kernel(%arg0: i32, %arg1: memref<16x64xf32, #tpu.memory_space<vmem>>, %arg2: memref<1x64xf32, #tpu.memory_space<vmem>>, %arg3: memref<1x64xf32, #tpu.memory_space<vmem>>, %arg4: memref<128x64xf32, #tpu.memory_space<vmem>>, %arg5: memref<1x64xf32, #tpu.memory_space<vmem>>, %arg6: memref<16x64xf32, #tpu.memory_space<vmem>>, %arg7: memref<1x2x64xf32, #tpu.memory_space<vmem>>) attributes {dimension_semantics = [#tpu.dimension_semantics<parallel>], iteration_bounds = array<i64: 2>, scalar_prefetch = 0 : i64, scratch_operands = 0 : i64, tpu.core_type = #tpu.core_type<tc>, window_params = [{transform_indices = @transform_0, window_bounds = array<i64: 16, 64>}, {pipeline_mode = #tpu.pipeline_mode<synchronous>, transform_indices = @transform_1, window_bounds = array<i64: 1, 64>}, {pipeline_mode = #tpu.pipeline_mode<synchronous>, transform_indices = @transform_2, window_bounds = array<i64: 1, 64>}, {pipeline_mode = #tpu.pipeline_mode<synchronous>, transform_indices = @transform_3, window_bounds = array<i64: 128, 64>}, {pipeline_mode = #tpu.pipeline_mode<synchronous>, transform_indices = @transform_4, window_bounds = array<i64: 1, 64>}, {transform_indices = @transform_5, window_bounds = array<i64: 16, 64>}, {transform_indices = @transform_6, window_bounds = array<i64: 1, 2, 64>}]} {
    %c0 = arith.constant 0 : index
    %c0_0 = arith.constant 0 : index
    %0 = vector.load %arg1[%c0, %c0_0] : memref<16x64xf32, #tpu.memory_space<vmem>>, vector<16x64xf32>
    %c0_1 = arith.constant 0 : index
    %c0_2 = arith.constant 0 : index
    %1 = vector.load %arg2[%c0_1, %c0_2] : memref<1x64xf32, #tpu.memory_space<vmem>>, vector<1x64xf32>
    %2 = vector.broadcast %1 : vector<1x64xf32> to vector<16x64xf32>
    %3 = arith.mulf %0, %2 : vector<16x64xf32>
    %c0_3 = arith.constant 0 : index
    %c0_4 = arith.constant 0 : index
    %4 = vector.load %arg3[%c0_3, %c0_4] : memref<1x64xf32, #tpu.memory_space<vmem>>, vector<1x64xf32>
    %5 = vector.broadcast %4 : vector<1x64xf32> to vector<16x64xf32>
    %6 = arith.addf %3, %5 : vector<16x64xf32>
    %cst = arith.constant 0.000000e+00 : f32
    %7 = vector.broadcast %cst : f32 to vector<16x64xf32>
    %8 = arith.maximumf %6, %7 : vector<16x64xf32>
    %cst_5 = arith.constant 0.000000e+00 : f32
    %9 = vector.broadcast %cst_5 : f32 to vector<1x64xf32>
    %10 = vector.extract_strided_slice %8 {offsets = [0, 0], sizes = [15, 64], strides = [1, 1]} : vector<16x64xf32> to vector<15x64xf32>
    %11 = tpu.concatenate %9, %10 in 0 : vector<1x64xf32>, vector<15x64xf32> -> vector<16x64xf32>
    %12 = tpu.concatenate %11, %8 in 1 : vector<16x64xf32>, vector<16x64xf32> -> vector<16x128xf32>
    %c0_6 = arith.constant 0 : index
    %c0_7 = arith.constant 0 : index
    %13 = vector.load %arg4[%c0_6, %c0_7] : memref<128x64xf32, #tpu.memory_space<vmem>>, vector<128x64xf32>
    %cst_8 = arith.constant dense<0.000000e+00> : vector<16x64xf32>
    %14 = tpu.matmul %12, %13, %cst_8 {dimension_numbers = #tpu.dot_dimension_numbers<[1], [0], [0], [1], [0, 0, 1, 1], [], []>} : vector<16x128xf32>, vector<128x64xf32>, vector<16x64xf32> -> vector<16x64xf32>
    %c0_9 = arith.constant 0 : index
    %c0_10 = arith.constant 0 : index
    %15 = vector.load %arg5[%c0_9, %c0_10] : memref<1x64xf32, #tpu.memory_space<vmem>>, vector<1x64xf32>
    %16 = vector.broadcast %15 : vector<1x64xf32> to vector<16x64xf32>
    %17 = arith.addf %14, %16 : vector<16x64xf32>
    %c0_11 = arith.constant 0 : index
    %c0_12 = arith.constant 0 : index
    %18 = vector.load %arg6[%c0_11, %c0_12] : memref<16x64xf32, #tpu.memory_space<vmem>>, vector<16x64xf32>
    tpu.vector_store %arg6[%c0_11, %c0_12], %17 {strides = array<i32>} : memref<16x64xf32, #tpu.memory_space<vmem>>, vector<16x64xf32>,
    %cst_13 = arith.constant dense<0.000000e+00> : vector<64xf32>
    %19 = vector.multi_reduction <add>, %17, %cst_13 [0] : vector<16x64xf32> to vector<64xf32>
    %20 = vector.shape_cast %19 : vector<64xf32> to vector<1x64xf32>
    %21 = arith.mulf %17, %17 : vector<16x64xf32>
    %cst_14 = arith.constant dense<0.000000e+00> : vector<64xf32>
    %22 = vector.multi_reduction <add>, %21, %cst_14 [0] : vector<16x64xf32> to vector<64xf32>
    %23 = vector.shape_cast %22 : vector<64xf32> to vector<1x64xf32>
    %24 = tpu.concatenate %20, %23 in 0 : vector<1x64xf32>, vector<1x64xf32> -> vector<2x64xf32>
    %25 = vector.shape_cast %24 : vector<2x64xf32> to vector<1x2x64xf32>
    %c0_15 = arith.constant 0 : index
    %c0_16 = arith.constant 0 : index
    %c0_17 = arith.constant 0 : index
    %26 = vector.load %arg7[%c0_15, %c0_16, %c0_17] : memref<1x2x64xf32, #tpu.memory_space<vmem>>, vector<1x2x64xf32>
    tpu.vector_store %arg7[%c0_15, %c0_16, %c0_17], %25 {strides = array<i32>} : memref<1x2x64xf32, #tpu.memory_space<vmem>>, vector<1x2x64xf32>,
    return
  }
  func.func @transform_0(%arg0: i32) -> (i32, i32) {
    %c0_i32 = arith.constant 0 : i32
    %c0_i32_0 = arith.constant 0 : i32
    return %arg0, %c0_i32 : i32, i32
  }
  func.func @transform_1(%arg0: i32) -> (i32, i32) {
    %c0_i32 = arith.constant 0 : i32
    %c0_i32_0 = arith.constant 0 : i32
    %c0_i32_1 = arith.constant 0 : i32
    return %c0_i32, %c0_i32_0 : i32, i32
  }
  func.func @transform_2(%arg0: i32) -> (i32, i32) {
    %c0_i32 = arith.constant 0 : i32
    %c0_i32_0 = arith.constant 0 : i32
    %c0_i32_1 = arith.constant 0 : i32
    return %c0_i32, %c0_i32_0 : i32, i32
  }
  func.func @transform_3(%arg0: i32) -> (i32, i32) {
    %c0_i32 = arith.constant 0 : i32
    %c0_i32_0 = arith.constant 0 : i32
    %c0_i32_1 = arith.constant 0 : i32
    return %c0_i32, %c0_i32_0 : i32, i32
  }
  func.func @transform_4(%arg0: i32) -> (i32, i32) {
    %c0_i32 = arith.constant 0 : i32
    %c0_i32_0 = arith.constant 0 : i32
    %c0_i32_1 = arith.constant 0 : i32
    return %c0_i32, %c0_i32_0 : i32, i32
  }
  func.func @transform_5(%arg0: i32) -> (i32, i32) {
    %c0_i32 = arith.constant 0 : i32
    %c0_i32_0 = arith.constant 0 : i32
    return %arg0, %c0_i32 : i32, i32
  }
  func.func @transform_6(%arg0: i32) -> (i32, i32, i32) {
    %c0_i32 = arith.constant 0 : i32
    %c0_i32_0 = arith.constant 0 : i32
    %c0_i32_1 = arith.constant 0 : i32
    return %arg0, %c0_i32, %c0_i32_0 : i32, i32, i32
  }
}

module attributes {stable_mosaic.version = 11 : i64} {
  func.func @_norm_conv_stats_kernel(%arg0: i32, %arg1: memref<8x64xf32, #tpu.memory_space<vmem>>, %arg2: memref<1x64xf32, #tpu.memory_space<vmem>>, %arg3: memref<1x64xf32, #tpu.memory_space<vmem>>, %arg4: memref<64x128xf32, #tpu.memory_space<vmem>>, %arg5: memref<1x128xf32, #tpu.memory_space<vmem>>, %arg6: memref<8x128xf32, #tpu.memory_space<vmem>>, %arg7: memref<1x2x128xf32, #tpu.memory_space<vmem>>) attributes {dimension_semantics = [#tpu.dimension_semantics<parallel>], iteration_bounds = array<i64: 4>, scalar_prefetch = 0 : i64, scratch_operands = 0 : i64, tpu.core_type = #tpu.core_type<tc>, window_params = [{transform_indices = @transform_0, window_bounds = array<i64: 8, 64>}, {pipeline_mode = #tpu.pipeline_mode<synchronous>, transform_indices = @transform_1, window_bounds = array<i64: 1, 64>}, {pipeline_mode = #tpu.pipeline_mode<synchronous>, transform_indices = @transform_2, window_bounds = array<i64: 1, 64>}, {pipeline_mode = #tpu.pipeline_mode<synchronous>, transform_indices = @transform_3, window_bounds = array<i64: 64, 128>}, {pipeline_mode = #tpu.pipeline_mode<synchronous>, transform_indices = @transform_4, window_bounds = array<i64: 1, 128>}, {transform_indices = @transform_5, window_bounds = array<i64: 8, 128>}, {transform_indices = @transform_6, window_bounds = array<i64: 1, 2, 128>}]} {
    %c0 = arith.constant 0 : index
    %c0_0 = arith.constant 0 : index
    %0 = vector.load %arg1[%c0, %c0_0] : memref<8x64xf32, #tpu.memory_space<vmem>>, vector<8x64xf32>
    %c0_1 = arith.constant 0 : index
    %c0_2 = arith.constant 0 : index
    %1 = vector.load %arg2[%c0_1, %c0_2] : memref<1x64xf32, #tpu.memory_space<vmem>>, vector<1x64xf32>
    %2 = vector.broadcast %1 : vector<1x64xf32> to vector<8x64xf32>
    %3 = arith.mulf %0, %2 : vector<8x64xf32>
    %c0_3 = arith.constant 0 : index
    %c0_4 = arith.constant 0 : index
    %4 = vector.load %arg3[%c0_3, %c0_4] : memref<1x64xf32, #tpu.memory_space<vmem>>, vector<1x64xf32>
    %5 = vector.broadcast %4 : vector<1x64xf32> to vector<8x64xf32>
    %6 = arith.addf %3, %5 : vector<8x64xf32>
    %cst = arith.constant 0.000000e+00 : f32
    %7 = vector.broadcast %cst : f32 to vector<8x64xf32>
    %8 = arith.maximumf %6, %7 : vector<8x64xf32>
    %c0_5 = arith.constant 0 : index
    %c0_6 = arith.constant 0 : index
    %9 = vector.load %arg4[%c0_5, %c0_6] : memref<64x128xf32, #tpu.memory_space<vmem>>, vector<64x128xf32>
    %cst_7 = arith.constant dense<0.000000e+00> : vector<8x128xf32>
    %10 = tpu.matmul %8, %9, %cst_7 {dimension_numbers = #tpu.dot_dimension_numbers<[1], [0], [0], [1], [0, 0, 1, 1], [], []>} : vector<8x64xf32>, vector<64x128xf32>, vector<8x128xf32> -> vector<8x128xf32>
    %c0_8 = arith.constant 0 : index
    %c0_9 = arith.constant 0 : index
    %11 = vector.load %arg5[%c0_8, %c0_9] : memref<1x128xf32, #tpu.memory_space<vmem>>, vector<1x128xf32>
    %12 = vector.broadcast %11 : vector<1x128xf32> to vector<8x128xf32>
    %13 = arith.addf %10, %12 : vector<8x128xf32>
    %c0_10 = arith.constant 0 : index
    %c0_11 = arith.constant 0 : index
    %14 = vector.load %arg6[%c0_10, %c0_11] : memref<8x128xf32, #tpu.memory_space<vmem>>, vector<8x128xf32>
    tpu.vector_store %arg6[%c0_10, %c0_11], %13 {strides = array<i32>} : memref<8x128xf32, #tpu.memory_space<vmem>>, vector<8x128xf32>,
    %cst_12 = arith.constant dense<0.000000e+00> : vector<128xf32>
    %15 = vector.multi_reduction <add>, %13, %cst_12 [0] : vector<8x128xf32> to vector<128xf32>
    %16 = vector.shape_cast %15 : vector<128xf32> to vector<1x128xf32>
    %17 = arith.mulf %13, %13 : vector<8x128xf32>
    %cst_13 = arith.constant dense<0.000000e+00> : vector<128xf32>
    %18 = vector.multi_reduction <add>, %17, %cst_13 [0] : vector<8x128xf32> to vector<128xf32>
    %19 = vector.shape_cast %18 : vector<128xf32> to vector<1x128xf32>
    %20 = tpu.concatenate %16, %19 in 0 : vector<1x128xf32>, vector<1x128xf32> -> vector<2x128xf32>
    %21 = vector.shape_cast %20 : vector<2x128xf32> to vector<1x2x128xf32>
    %c0_14 = arith.constant 0 : index
    %c0_15 = arith.constant 0 : index
    %c0_16 = arith.constant 0 : index
    %22 = vector.load %arg7[%c0_14, %c0_15, %c0_16] : memref<1x2x128xf32, #tpu.memory_space<vmem>>, vector<1x2x128xf32>
    tpu.vector_store %arg7[%c0_14, %c0_15, %c0_16], %21 {strides = array<i32>} : memref<1x2x128xf32, #tpu.memory_space<vmem>>, vector<1x2x128xf32>,
    return
  }
  func.func @transform_0(%arg0: i32) -> (i32, i32) {
    %c0_i32 = arith.constant 0 : i32
    %c0_i32_0 = arith.constant 0 : i32
    return %arg0, %c0_i32 : i32, i32
  }
  func.func @transform_1(%arg0: i32) -> (i32, i32) {
    %c0_i32 = arith.constant 0 : i32
    %c0_i32_0 = arith.constant 0 : i32
    %c0_i32_1 = arith.constant 0 : i32
    return %c0_i32, %c0_i32_0 : i32, i32
  }
  func.func @transform_2(%arg0: i32) -> (i32, i32) {
    %c0_i32 = arith.constant 0 : i32
    %c0_i32_0 = arith.constant 0 : i32
    %c0_i32_1 = arith.constant 0 : i32
    return %c0_i32, %c0_i32_0 : i32, i32
  }
  func.func @transform_3(%arg0: i32) -> (i32, i32) {
    %c0_i32 = arith.constant 0 : i32
    %c0_i32_0 = arith.constant 0 : i32
    %c0_i32_1 = arith.constant 0 : i32
    return %c0_i32, %c0_i32_0 : i32, i32
  }
  func.func @transform_4(%arg0: i32) -> (i32, i32) {
    %c0_i32 = arith.constant 0 : i32
    %c0_i32_0 = arith.constant 0 : i32
    %c0_i32_1 = arith.constant 0 : i32
    return %c0_i32, %c0_i32_0 : i32, i32
  }
  func.func @transform_5(%arg0: i32) -> (i32, i32) {
    %c0_i32 = arith.constant 0 : i32
    %c0_i32_0 = arith.constant 0 : i32
    return %arg0, %c0_i32 : i32, i32
  }
  func.func @transform_6(%arg0: i32) -> (i32, i32, i32) {
    %c0_i32 = arith.constant 0 : i32
    %c0_i32_0 = arith.constant 0 : i32
    %c0_i32_1 = arith.constant 0 : i32
    return %arg0, %c0_i32, %c0_i32_0 : i32, i32, i32
  }
}

module attributes {stable_mosaic.version = 11 : i64} {
  func.func @_residual_finalize_kernel(%arg0: i32, %arg1: memref<8x128xf32, #tpu.memory_space<vmem>>, %arg2: memref<8x128xf32, #tpu.memory_space<vmem>>, %arg3: memref<1x128xf32, #tpu.memory_space<vmem>>, %arg4: memref<1x128xf32, #tpu.memory_space<vmem>>, %arg5: memref<8x128xf32, #tpu.memory_space<vmem>>) attributes {dimension_semantics = [#tpu.dimension_semantics<parallel>], iteration_bounds = array<i64: 4>, scalar_prefetch = 0 : i64, scratch_operands = 0 : i64, tpu.core_type = #tpu.core_type<tc>, window_params = [{transform_indices = @transform_0, window_bounds = array<i64: 8, 128>}, {transform_indices = @transform_1, window_bounds = array<i64: 8, 128>}, {pipeline_mode = #tpu.pipeline_mode<synchronous>, transform_indices = @transform_2, window_bounds = array<i64: 1, 128>}, {pipeline_mode = #tpu.pipeline_mode<synchronous>, transform_indices = @transform_3, window_bounds = array<i64: 1, 128>}, {transform_indices = @transform_4, window_bounds = array<i64: 8, 128>}]} {
    %c0 = arith.constant 0 : index
    %c0_0 = arith.constant 0 : index
    %0 = vector.load %arg1[%c0, %c0_0] : memref<8x128xf32, #tpu.memory_space<vmem>>, vector<8x128xf32>
    %c0_1 = arith.constant 0 : index
    %c0_2 = arith.constant 0 : index
    %1 = vector.load %arg2[%c0_1, %c0_2] : memref<8x128xf32, #tpu.memory_space<vmem>>, vector<8x128xf32>
    %c0_3 = arith.constant 0 : index
    %c0_4 = arith.constant 0 : index
    %2 = vector.load %arg3[%c0_3, %c0_4] : memref<1x128xf32, #tpu.memory_space<vmem>>, vector<1x128xf32>
    %3 = vector.broadcast %2 : vector<1x128xf32> to vector<8x128xf32>
    %4 = arith.mulf %1, %3 : vector<8x128xf32>
    %c0_5 = arith.constant 0 : index
    %c0_6 = arith.constant 0 : index
    %5 = vector.load %arg4[%c0_5, %c0_6] : memref<1x128xf32, #tpu.memory_space<vmem>>, vector<1x128xf32>
    %6 = vector.broadcast %5 : vector<1x128xf32> to vector<8x128xf32>
    %7 = arith.addf %4, %6 : vector<8x128xf32>
    %cst = arith.constant 0.000000e+00 : f32
    %8 = vector.broadcast %cst : f32 to vector<8x128xf32>
    %9 = arith.maximumf %7, %8 : vector<8x128xf32>
    %10 = arith.addf %0, %9 : vector<8x128xf32>
    %c0_7 = arith.constant 0 : index
    %c0_8 = arith.constant 0 : index
    %11 = vector.load %arg5[%c0_7, %c0_8] : memref<8x128xf32, #tpu.memory_space<vmem>>, vector<8x128xf32>
    tpu.vector_store %arg5[%c0_7, %c0_8], %10 {strides = array<i32>} : memref<8x128xf32, #tpu.memory_space<vmem>>, vector<8x128xf32>,
    return
  }
  func.func @transform_0(%arg0: i32) -> (i32, i32) {
    %c0_i32 = arith.constant 0 : i32
    %c0_i32_0 = arith.constant 0 : i32
    return %arg0, %c0_i32 : i32, i32
  }
  func.func @transform_1(%arg0: i32) -> (i32, i32) {
    %c0_i32 = arith.constant 0 : i32
    %c0_i32_0 = arith.constant 0 : i32
    return %arg0, %c0_i32 : i32, i32
  }
  func.func @transform_2(%arg0: i32) -> (i32, i32) {
    %c0_i32 = arith.constant 0 : i32
    %c0_i32_0 = arith.constant 0 : i32
    %c0_i32_1 = arith.constant 0 : i32
    return %c0_i32, %c0_i32_0 : i32, i32
  }
  func.func @transform_3(%arg0: i32) -> (i32, i32) {
    %c0_i32 = arith.constant 0 : i32
    %c0_i32_0 = arith.constant 0 : i32
    %c0_i32_1 = arith.constant 0 : i32
    return %c0_i32, %c0_i32_0 : i32, i32
  }
  func.func @transform_4(%arg0: i32) -> (i32, i32) {
    %c0_i32 = arith.constant 0 : i32
    %c0_i32_0 = arith.constant 0 : i32
    return %arg0, %c0_i32 : i32, i32
  }
}

</mosaic_0001>

<bundles_post_ra>
// kernel: tile.48
= control target key start
LH: loop header
LB: loop body
LE: loop exit
PB: predicated region body
PF: predicated region fallthrough
CT: control target
= control target key end

     0   :  { %s28_s0 = inlined_call_operand.vmem [shape: f32[4], index: 0, kind: input, shape index: {}]   ;;  %s29_s1 = inlined_call_operand.vmem [shape: f32[16,4], index: 1, kind: output, shape index: {}]  }
   0x1   :  { %v4_v0 = vld [vmem:[%s28_s0] ss:$0 sm:$0xff] }
   0x2   :  { %5 = vst [vmem:[%s29_s1] sm:$0xff] %v4_v0  ;;  %8 = vst [vmem:[%s29_s1 + $0x8] sm:$0xff] %v4_v0 }

// kernel: tile.49
= control target key start
LH: loop header
LB: loop body
LE: loop exit
PB: predicated region body
PF: predicated region fallthrough
CT: control target
= control target key end

     0   :  { %s131_s10 = smov 60   ;;  %s132_s11 = smov 52   ;;  %vm3_vm0 = vcmask 31744   ;;  %vm9_vm1 = vcmask 523744   ;;  %vm15_vm2 = vcmask 490944   ;;  %vm21_vm3 = vcmask 458144   ;;  %s207_s0 = inlined_call_operand.vmem [shape: f32[16,4], index: 0, kind: input, shape index: {}]   ;;  %s208_s1 = inlined_call_operand.vmem [shape: f32[1,64], index: 1, kind: output, shape index: {}]  }
   0x1   :  { %v101_v0 = vld [vmem:[%s207_s0 + $0xf] sm:$0x1]   ;;  %v103_v1 = vld [vmem:[%s207_s0 + $0xd] sm:$0x1]   ;;  %v102_v2 = vld [vmem:[%s207_s0 + $0xe] sm:$0x1]  }
   0x2   :  { %7 = vrot.lane.b32.xlu0 %v101_v0, %s131_s10  ;;  %19 = vrot.lane.b32.xlu1 %v103_v1, %s132_s11  ;;  %v104_v3 = vld [vmem:[%s207_s0 + $0xc] sm:$0x1]   ;;  %s133_s16 = smov 56   ;;  %s134_s17 = smov 48   ;;  %v105_v4 = vld [vmem:[%s207_s0 + $0xb] sm:$0x1]  }
   0x3   :  { %v106_v5 = vld [vmem:[%s207_s0 + $0xa] sm:$0x1]   ;;  %v2_v6 = vld [vmem:[%s207_s0] sm:$0x1]   ;;  %s135_s24 = smov 44   ;;  %s136_s25 = smov 40  }
   0x4   :  { %4 = vst.msk [vmem:[#allocation0] sm:$0x1] %vm3_vm0, %v2_v6   ;;  %v107_v7 = vld [vmem:[%s207_s0 + $0x9] sm:$0x1]   ;;  %v108_v8 = vld [vmem:[%s207_s0 + $0x8] sm:$0x1]  }
   0x5   :  { %s137_s30 = smov 36   ;;  %s138_s2 = smov 32   ;;  %v109_v9 = vld [vmem:[%s207_s0 + $0x7] sm:$0x1]   ;;  %v110_v10 = vld [vmem:[%s207_s0 + $0x6] sm:$0x1]  }
   0x6   :  { %13 = vrot.lane.b32.xlu0 %v102_v2, %s133_s16  ;;  %25 = vrot.lane.b32.xlu1 %v104_v3, %s134_s17  ;;  %s139_s7 = smov 28   ;;  %s140_s8 = smov 24   ;;  %v111_v11 = vld [vmem:[%s207_s0 + $0x5] sm:$0x1]   ;;  %v112_v12 = vld [vmem:[%s207_s0 + $0x4] sm:$0x1]  }
   0x7   :  { %s141_s13 = smov 20   ;;  %s142_s14 = smov 16   ;;  %v113_v13 = vld [vmem:[%s207_s0 + $0x3] sm:$0x1]   ;;  %v114_v14 = vld [vmem:[%s207_s0 + $0x2] sm:$0x1]  }
   0x8   :  { %s143_s19 = smov 12   ;;  %s144_s20 = smov 8   ;;  %v115_v15 = vld [vmem:[%s207_s0 + $0x1] sm:$0x1]   ;;  %vm27_vm4 = vcmask 425344   ;;  %vm33_vm5 = vcmask 392544  }
   0x9   :  { %s145_s0 = smov 4   ;;  %vm39_vm6 = vcmask 359744   ;;  %vm45_vm7 = vcmask 326944   ;;  %vm51_vm8 = vcmask 294144   ;;  %vm57_vm9 = vcmask 261344  }
   0xa   :  { %31 = vrot.lane.b32.xlu0 %v105_v4, %s135_s24  ;;  %37 = vrot.lane.b32.xlu1 %v106_v5, %s136_s25  ;;  %vm63_vm10 = vcmask 228544   ;;  %vm69_vm11 = vcmask 195744   ;;  %vm75_vm12 = vcmask 162944   ;;  %vm81_vm13 = vcmask 130144  }
   0xb   :  { %vm87_vm14 = vcmask 97344   ;;  %vm93_vm15 = vcmask 64544  }
   0xe   :  { %43 = vrot.lane.b32.xlu0 %v107_v7, %s137_s30  ;;  %49 = vrot.lane.b32.xlu1 %v108_v8, %s138_s2 }
  0x12   :  { %55 = vrot.lane.b32.xlu0 %v109_v9, %s139_s7  ;;  %61 = vrot.lane.b32.xlu1 %v110_v10, %s140_s8 }
  0x16   :  { %67 = vrot.lane.b32.xlu0 %v111_v11, %s141_s13  ;;  %73 = vrot.lane.b32.xlu1 %v112_v12, %s142_s14 }
  0x1a   :  { %79 = vrot.lane.b32.xlu0 %v113_v13, %s143_s19  ;;  %85 = vrot.lane.b32.xlu1 %v114_v14, %s144_s20 }
  0x1e   :  { %91 = vrot.lane.b32.xlu0 %v115_v15, %s145_s0 }
  0x74   :  { %v8_v16 = vpop.permute.xlu0 %7   ;;  %v20_v17 = vpop.permute.xlu1 %19  }
  0x75   :  { %10 = vst.msk [vmem:[#allocation0] sm:$0x1] %vm9_vm1, %v8_v16  }
  0x78   :  { %v14_v18 = vpop.permute.xlu0 %13   ;;  %v26_v19 = vpop.permute.xlu1 %25  }
  0x79   :  { %16 = vst.msk [vmem:[#allocation0] sm:$0x1] %vm15_vm2, %v14_v18  }
  0x7a   :  { %22 = vst.msk [vmem:[#allocation0] sm:$0x1] %vm21_vm3, %v20_v17  }
  0x7b   :  { %28 = vst.msk [vmem:[#allocation0] sm:$0x1] %vm27_vm4, %v26_v19  }
  0x7c   :  { %v32_v20 = vpop.permute.xlu0 %31   ;;  %v38_v21 = vpop.permute.xlu1 %37  }
  0x7d   :  { %34 = vst.msk [vmem:[#allocation0] sm:$0x1] %vm33_vm5, %v32_v20  }
  0x7e   :  { %40 = vst.msk [vmem:[#allocation0] sm:$0x1] %vm39_vm6, %v38_v21  }
  0x80   :  { %v44_v22 = vpop.permute.xlu0 %43   ;;  %v50_v23 = vpop.permute.xlu1 %49  }
  0x81   :  { %46 = vst.msk [vmem:[#allocation0] sm:$0x1] %vm45_vm7, %v44_v22  }
  0x82   :  { %52 = vst.msk [vmem:[#allocation0] sm:$0x1] %vm51_vm8, %v50_v23  }
  0x84   :  { %v56_v24 = vpop.permute.xlu0 %55   ;;  %v62_v25 = vpop.permute.xlu1 %61  }
  0x85   :  { %58 = vst.msk [vmem:[#allocation0] sm:$0x1] %vm57_vm9, %v56_v24  }
  0x86   :  { %64 = vst.msk [vmem:[#allocation0] sm:$0x1] %vm63_vm10, %v62_v25  }
  0x88   :  { %v68_v26 = vpop.permute.xlu0 %67   ;;  %v74_v27 = vpop.permute.xlu1 %73  }
  0x89   :  { %70 = vst.msk [vmem:[#allocation0] sm:$0x1] %vm69_vm11, %v68_v26  }
  0x8a   :  { %76 = vst.msk [vmem:[#allocation0] sm:$0x1] %vm75_vm12, %v74_v27  }
  0x8c   :  { %v80_v28 = vpop.permute.xlu0 %79   ;;  %v86_v29 = vpop.permute.xlu1 %85  }
  0x8d   :  { %82 = vst.msk [vmem:[#allocation0] sm:$0x1] %vm81_vm13, %v80_v28  }
  0x8e   :  { %88 = vst.msk [vmem:[#allocation0] sm:$0x1] %vm87_vm14, %v86_v29  }
  0x90   :  { %v92_v30 = vpop.permute.xlu0 %91  }
  0x91   :  { %94 = vst.msk [vmem:[#allocation0] sm:$0x1] %vm93_vm15, %v92_v30  }
  0x98   :  { %v98_v31 = vld [vmem:[#allocation0] sm:$0x1] }
  0x99   :  { %100 = vst [vmem:[%s208_s1] sm:$0x1] %v98_v31 }

// kernel: tile.58
= control target key start
LH: loop header
LB: loop body
LE: loop exit
PB: predicated region body
PF: predicated region fallthrough
CT: control target
= control target key end

     0   :  { %s28_s0 = inlined_call_operand.vmem [shape: f32[8], index: 0, kind: input, shape index: {}]   ;;  %s29_s1 = inlined_call_operand.vmem [shape: f32[16,8], index: 1, kind: output, shape index: {}]  }
   0x1   :  { %v4_v0 = vld [vmem:[%s28_s0] ss:$0 sm:$0xff] }
   0x2   :  { %5 = vst [vmem:[%s29_s1] sm:$0xff] %v4_v0  ;;  %8 = vst [vmem:[%s29_s1 + $0x8] sm:$0xff] %v4_v0 }

// kernel: tile.59
= control target key start
LH: loop header
LB: loop body
LE: loop exit
PB: predicated region body
PF: predicated region fallthrough
CT: control target
= control target key end

     0   :  { %s131_s10 = smov 120   ;;  %s132_s11 = smov 104   ;;  %vm3_vm0 = vcmask 64512   ;;  %vm9_vm1 = vcmask 1048512   ;;  %vm15_vm2 = vcmask 982912   ;;  %vm21_vm3 = vcmask 917312   ;;  %s207_s0 = inlined_call_operand.vmem [shape: f32[16,8], index: 0, kind: input, shape index: {}]   ;;  %s208_s1 = inlined_call_operand.vmem [shape: f32[1,128], index: 1, kind: output, shape index: {}]  }
   0x1   :  { %v101_v0 = vld [vmem:[%s207_s0 + $0xf] sm:$0x1]   ;;  %v103_v1 = vld [vmem:[%s207_s0 + $0xd] sm:$0x1]   ;;  %v102_v2 = vld [vmem:[%s207_s0 + $0xe] sm:$0x1]  }
   0x2   :  { %7 = vrot.lane.b32.xlu0 %v101_v0, %s131_s10  ;;  %19 = vrot.lane.b32.xlu1 %v103_v1, %s132_s11  ;;  %v104_v3 = vld [vmem:[%s207_s0 + $0xc] sm:$0x1]   ;;  %s133_s16 = smov 112   ;;  %s134_s17 = smov 96   ;;  %v105_v4 = vld [vmem:[%s207_s0 + $0xb] sm:$0x1]  }
   0x3   :  { %v106_v5 = vld [vmem:[%s207_s0 + $0xa] sm:$0x1]   ;;  %v2_v6 = vld [vmem:[%s207_s0] sm:$0x1]   ;;  %s135_s24 = smov 88   ;;  %s136_s25 = smov 80  }
   0x4   :  { %4 = vst.msk [vmem:[#allocation0] sm:$0x1] %vm3_vm0, %v2_v6   ;;  %v107_v7 = vld [vmem:[%s207_s0 + $0x9] sm:$0x1]   ;;  %v108_v8 = vld [vmem:[%s207_s0 + $0x8] sm:$0x1]  }
   0x5   :  { %s137_s30 = smov 72   ;;  %s138_s2 = smov 64   ;;  %v109_v9 = vld [vmem:[%s207_s0 + $0x7] sm:$0x1]   ;;  %v110_v10 = vld [vmem:[%s207_s0 + $0x6] sm:$0x1]  }
   0x6   :  { %13 = vrot.lane.b32.xlu0 %v102_v2, %s133_s16  ;;  %25 = vrot.lane.b32.xlu1 %v104_v3, %s134_s17  ;;  %s139_s7 = smov 56   ;;  %s140_s8 = smov 48   ;;  %v111_v11 = vld [vmem:[%s207_s0 + $0x5] sm:$0x1]   ;;  %v112_v12 = vld [vmem:[%s207_s0 + $0x4] sm:$0x1]  }
   0x7   :  { %s141_s13 = smov 40   ;;  %s142_s14 = smov 32   ;;  %v113_v13 = vld [vmem:[%s207_s0 + $0x3] sm:$0x1]   ;;  %v114_v14 = vld [vmem:[%s207_s0 + $0x2] sm:$0x1]  }
   0x8   :  { %s143_s19 = smov 24   ;;  %s144_s20 = smov 16   ;;  %v115_v15 = vld [vmem:[%s207_s0 + $0x1] sm:$0x1]   ;;  %vm27_vm4 = vcmask 851712   ;;  %vm33_vm5 = vcmask 786112  }
   0x9   :  { %s145_s0 = smov 8   ;;  %vm39_vm6 = vcmask 720512   ;;  %vm45_vm7 = vcmask 654912   ;;  %vm51_vm8 = vcmask 589312   ;;  %vm57_vm9 = vcmask 523712  }
   0xa   :  { %31 = vrot.lane.b32.xlu0 %v105_v4, %s135_s24  ;;  %37 = vrot.lane.b32.xlu1 %v106_v5, %s136_s25  ;;  %vm63_vm10 = vcmask 458112   ;;  %vm69_vm11 = vcmask 392512   ;;  %vm75_vm12 = vcmask 326912   ;;  %vm81_vm13 = vcmask 261312  }
   0xb   :  { %vm87_vm14 = vcmask 195712   ;;  %vm93_vm15 = vcmask 130112  }
   0xe   :  { %43 = vrot.lane.b32.xlu0 %v107_v7, %s137_s30  ;;  %49 = vrot.lane.b32.xlu1 %v108_v8, %s138_s2 }
  0x12   :  { %55 = vrot.lane.b32.xlu0 %v109_v9, %s139_s7  ;;  %61 = vrot.lane.b32.xlu1 %v110_v10, %s140_s8 }
  0x16   :  { %67 = vrot.lane.b32.xlu0 %v111_v11, %s141_s13  ;;  %73 = vrot.lane.b32.xlu1 %v112_v12, %s142_s14 }
  0x1a   :  { %79 = vrot.lane.b32.xlu0 %v113_v13, %s143_s19  ;;  %85 = vrot.lane.b32.xlu1 %v114_v14, %s144_s20 }
  0x1e   :  { %91 = vrot.lane.b32.xlu0 %v115_v15, %s145_s0 }
  0x74   :  { %v8_v16 = vpop.permute.xlu0 %7   ;;  %v20_v17 = vpop.permute.xlu1 %19  }
  0x75   :  { %10 = vst.msk [vmem:[#allocation0] sm:$0x1] %vm9_vm1, %v8_v16  }
  0x78   :  { %v14_v18 = vpop.permute.xlu0 %13   ;;  %v26_v19 = vpop.permute.xlu1 %25  }
  0x79   :  { %16 = vst.msk [vmem:[#allocation0] sm:$0x1] %vm15_vm2, %v14_v18  }
  0x7a   :  { %22 = vst.msk [vmem:[#allocation0] sm:$0x1] %vm21_vm3, %v20_v17  }
  0x7b   :  { %28 = vst.msk [vmem:[#allocation0] sm:$0x1] %vm27_vm4, %v26_v19  }
  0x7c   :  { %v32_v20 = vpop.permute.xlu0 %31   ;;  %v38_v21 = vpop.permute.xlu1 %37  }
  0x7d   :  { %34 = vst.msk [vmem:[#allocation0] sm:$0x1] %vm33_vm5, %v32_v20  }
  0x7e   :  { %40 = vst.msk [vmem:[#allocation0] sm:$0x1] %vm39_vm6, %v38_v21  }
  0x80   :  { %v44_v22 = vpop.permute.xlu0 %43   ;;  %v50_v23 = vpop.permute.xlu1 %49  }
  0x81   :  { %46 = vst.msk [vmem:[#allocation0] sm:$0x1] %vm45_vm7, %v44_v22  }
  0x82   :  { %52 = vst.msk [vmem:[#allocation0] sm:$0x1] %vm51_vm8, %v50_v23  }
  0x84   :  { %v56_v24 = vpop.permute.xlu0 %55   ;;  %v62_v25 = vpop.permute.xlu1 %61  }
  0x85   :  { %58 = vst.msk [vmem:[#allocation0] sm:$0x1] %vm57_vm9, %v56_v24  }
  0x86   :  { %64 = vst.msk [vmem:[#allocation0] sm:$0x1] %vm63_vm10, %v62_v25  }
  0x88   :  { %v68_v26 = vpop.permute.xlu0 %67   ;;  %v74_v27 = vpop.permute.xlu1 %73  }
  0x89   :  { %70 = vst.msk [vmem:[#allocation0] sm:$0x1] %vm69_vm11, %v68_v26  }
  0x8a   :  { %76 = vst.msk [vmem:[#allocation0] sm:$0x1] %vm75_vm12, %v74_v27  }
  0x8c   :  { %v80_v28 = vpop.permute.xlu0 %79   ;;  %v86_v29 = vpop.permute.xlu1 %85  }
  0x8d   :  { %82 = vst.msk [vmem:[#allocation0] sm:$0x1] %vm81_vm13, %v80_v28  }
  0x8e   :  { %88 = vst.msk [vmem:[#allocation0] sm:$0x1] %vm87_vm14, %v86_v29  }
  0x90   :  { %v92_v30 = vpop.permute.xlu0 %91  }
  0x91   :  { %94 = vst.msk [vmem:[#allocation0] sm:$0x1] %vm93_vm15, %v92_v30  }
  0x98   :  { %v98_v31 = vld [vmem:[#allocation0] sm:$0x1] }
  0x99   :  { %100 = vst [vmem:[%s208_s1] sm:$0x1] %v98_v31 }

// kernel: residual_block.4
= control target key start
LH: loop header
LB: loop body
LE: loop exit
PB: predicated region body
PF: predicated region fallthrough
CT: control target
= control target key end

     0   :  { %s537_s15 = smov 0   ;;  %s616_s0 = inlined_call_operand.vmem [shape: f32[32,128], index: 0, kind: input, shape index: {}]   ;;  %s617_s1 = inlined_call_operand.vmem [shape: f32[128,64], index: 1, kind: input, shape index: {}]   ;;  %s618_s2 = inlined_call_operand.vmem [shape: f32[1,64], index: 2, kind: input, shape index: {}]   ;;  %s619_s3 = inlined_call_operand.vmem [shape: f32[32,64], index: 3, kind: output, shape index: {0}]   ;;  %s620_s4 = inlined_call_operand.vmem [shape: f32[4,2,64], index: 4, kind: output, shape index: {1}]  }
   0x1 LB: > { %s403_s16 = sadd.s32 4294967295, %s507_s15   ;;  %p407_p0 = scmp.ge.s32.totalorder %s507_s15, 1  ;;  %s507_s15 = sphi %s537_s15, %s15_s15  }
   0x2   : > { %p164_p1 = scmp.lt.s32.totalorder %s507_s15, 5 }
   0x4   : > { %p165_p2 = pnand %p407_p0, %p164_p1 }
   0x5   : > { %v205_v0 = vld [vmem:[%s617_s1] sm:$0xff] (!%p165_p2)  ;;  %v206_v1 = vld [vmem:[%s617_s1 + $0x8] sm:$0xff] (!%p165_p2)  ;;  %v207_v2 = vld [vmem:[%s617_s1 + $0x10] sm:$0xff] (!%p165_p2)  ;;  %v509_v3 = vmov (!%p165_p2), 0.0|0.0   ;;  %vm510_vm0 = vmmov (!%p165_p2), 0   ;;  %v511_v6 = vmov (!%p165_p2), 0.0  }
   0x6   : > { %168 = sbr.rel (%p165_p2) target bundleno = 270 (0x10e), region = 32  ;;  %466 = vmatprep.subr.bf16.mxu0 (!%p165_p2), %v509_v3  ;;  %v467_v4 = vpack.c.bf16 (!%p165_p2), %v206_v1, %v205_v0  ;;  %v208_v5 = vld [vmem:[%s617_s1 + $0x18] sm:$0xff] (!%p165_p2)  ;;  %463 = vmatprep.mubr.msk.f32.mxu0 (!%p165_p2), %vm510_vm0, %v511_v6  ;;  %v209_v8 = vld [vmem:[%s617_s1 + $0x20] sm:$0xff] (!%p165_p2)  ;;  %v210_v9 = vld [vmem:[%s617_s1 + $0x28] sm:$0xff] (!%p165_p2)  ;;  %p192_p3 = scmp.lt.s32.totalorder (!%p165_p2), %s403_s16, 3  ;;  %vm298_vm1 = vcmask (!%p165_p2), 523264  }
   0x7   : > { %v470_v7 = vpack.c.bf16 (!%p165_p2), %v208_v5, %v207_v2  ;;  %v473_v10 = vpack.c.bf16 (!%p165_p2), %v210_v9, %v209_v8  ;;  %v211_v11 = vld [vmem:[%s617_s1 + $0x30] sm:$0xff] (!%p165_p2)  ;;  %v212_v12 = vld [vmem:[%s617_s1 + $0x38] sm:$0xff] (!%p165_p2)  ;;  %v213_v14 = vld [vmem:[%s617_s1 + $0x40] sm:$0xff] (!%p165_p2)  ;;  %vm315_vm2 = vcmask (!%p165_p2), 1040384   ;;  %vm317_vm3 = vcmask (!%p165_p2), 517120  }
   0x8   : > { %468 = vmatpush3.bf16.msra.mxu0 (!%p165_p2), %v467_v4  ;;  %v476_v13 = vpack.c.bf16 (!%p165_p2), %v212_v12, %v211_v11  ;;  %v214_v15 = vld [vmem:[%s617_s1 + $0x48] sm:$0xff] (!%p165_p2)  ;;  %v215_v17 = vld [vmem:[%s617_s1 + $0x50] sm:$0xff] (!%p165_p2)  ;;  %v216_v18 = vld [vmem:[%s617_s1 + $0x58] sm:$0xff] (!%p165_p2) }
   0x9   : > { %469 = vmatprep.subr.bf16.mxu0 (!%p165_p2), %v509_v3  ;;  %v479_v16 = vpack.c.bf16 (!%p165_p2), %v214_v15, %v213_v14  ;;  %v482_v19 = vpack.c.bf16 (!%p165_p2), %v216_v18, %v215_v17  ;;  %v217_v20 = vld [vmem:[%s617_s1 + $0x60] sm:$0xff] (!%p165_p2)  ;;  %v218_v21 = vld [vmem:[%s617_s1 + $0x68] sm:$0xff] (!%p165_p2)  ;;  %v219_v23 = vld [vmem:[%s617_s1 + $0x70] sm:$0xff] (!%p165_p2) }
   0xa   : > { %v485_v22 = vpack.c.bf16 (!%p165_p2), %v218_v21, %v217_v20  ;;  %v220_v24 = vld [vmem:[%s617_s1 + $0x78] sm:$0xff] (!%p165_p2)  ;;  %v411_v27 = vld [vmem:[%s618_s2] ss:$0 sm:$0xff] (!%p165_p2) }
   0xb   : > { %v488_v25 = vpack.c.bf16 (!%p165_p2), %v220_v24, %v219_v23 }
   0xc   : > { %471 = vmatpush3.bf16.msra.mxu0 (!%p165_p2), %v470_v7 }
   0xd   : > { %472 = vmatprep.subr.bf16.mxu0 %v509_v3  ;;  %s622_s16 = smov (!%p192_p3, %s403_s16), 3 }
   0xe   : > { %s408_s25 = sshll.u32 %s622_s16, 3  ;;  %s410_s8 = sshll.u32 %s622_s16, 1 }
   0xf   : > { %s195_s28 = scalar_lea.vmem %s616_s0, %s408_s25  ;;  %s199_s7 = scalar_lea.vmem %s619_s3, %s408_s25 }
  0x10   : > { %474 = vmatpush3.bf16.msra.mxu0 %v473_v10  ;;  %v204_v26 = vld [vmem:[%s195_s28] sm:$0xff]  ;;  %s203_s11 = scalar_lea.vmem %s620_s4, %s410_s8 }
  0x11   : > { %475 = vmatprep.subr.bf16.mxu0 %v509_v3 }
  0x14   : > { %477 = vmatpush3.bf16.msra.mxu0 %v476_v13 }
  0x15   : > { %478 = vmatprep.subr.bf16.mxu0 %v509_v3 }
  0x18   : > { %480 = vmatpush3.bf16.msra.mxu0 %v479_v16 }
  0x19   : > { %481 = vmatprep.subr.bf16.mxu0 %v509_v3 }
  0x1c   : > { %483 = vmatpush3.bf16.msra.mxu0 %v482_v19 }
  0x1d   : > { %484 = vmatprep.subr.bf16.mxu0 %v509_v3 }
  0x20   : > { %486 = vmatpush3.bf16.msra.mxu0 %v485_v22 }
  0x21   : > { %487 = vmatprep.subr.bf16.mxu0 %v509_v3 }
  0x24   : > { %489 = vmatpush3.bf16.msra.mxu0 %v488_v25 }
  0x27   : > { %464 = vmatmul.mubr.f32.vlgmr.msra.gmra.mrb[0].mxu0 %v204_v26 }
  0xfa   : > { %v294_v28 = vpop.f32.mrb[0].mxu0 }
  0xfb   : > { %v295_v29 = vadd.f32 %v411_v27, %v294_v28  ;;  %v465_v30 = vpop.f32.mrb[1].mxu0 }
  0xfd   : > { %299 = vst.msk [vmem:[%s199_s7] sm:$0xff] %vm298_vm1, %v295_v29  ;;  %v300_v31 = vsel %vm298_vm1, %v295_v29, 0.0  ;;  %v307_v32 = vmul.f32 %v295_v29, %v295_v29 }
  0xfe   : > { %v301_v33 = vrot.slane %v300_v31, 4 }
  0xff   : > { %v308_v34 = vsel %vm298_vm1, %v307_v32, 0.0 }
 0x100   : > { %v302_v35 = vadd.f32 %v301_v33, %v300_v31  ;;  %v309_v36 = vrot.slane %v308_v34, 4 }
 0x102   : > { %v303_v37 = vrot.slane %v302_v35, 2  ;;  %v310_v38 = vadd.f32 %v309_v36, %v308_v34 }
 0x104   : > { %v304_v39 = vadd.f32 %v303_v37, %v302_v35  ;;  %v311_v40 = vrot.slane %v310_v38, 2 }
 0x106   : > { %v305_v41 = vrot.slane %v304_v39, 1  ;;  %v312_v42 = vadd.f32 %v311_v40, %v310_v38 }
 0x108   : > { %v313_v43 = vrot.slane %v312_v42, 1  ;;  %v306_v44 = vadd.f32 %v305_v41, %v304_v39 }
 0x10a   : > { %v314_v45 = vadd.f32 %v313_v43, %v312_v42 }
 0x10c   : > { %v316_v46 = vsel %vm315_vm2, %v306_v44, %v314_v45 }
 0x10d   : > { %318 = vst.msk [vmem:[%s203_s11] sm:$0x3] %vm317_vm3, %v316_v46 }
 0x10e PF: > { %s15_s15 = sadd.s32 1, %s507_s15  }
 0x10f   : > { %p12_p4 = scmp.ge.s32.totalorder %s15_s15, 6  }
 0x111   :  { %14 = sbr.rel (!%p12_p4) target bundleno = 1 (0x1), region = 74 }

// kernel: residual_block.5
= control target key start
LH: loop header
LB: loop body
LE: loop exit
PB: predicated region body
PF: predicated region fallthrough
CT: control target
= control target key end

     0   :  { %s674_s21 = smov 0   ;;  %s774_s0 = inlined_call_operand.vmem [shape: f32[32,64], index: 0, kind: input, shape index: {}]   ;;  %s775_s1 = inlined_call_operand.vmem [shape: f32[1,64], index: 1, kind: input, shape index: {}]   ;;  %s776_s2 = inlined_call_operand.vmem [shape: f32[1,64], index: 2, kind: input, shape index: {}]   ;;  %s777_s3 = inlined_call_operand.vmem [shape: f32[128,64], index: 3, kind: input, shape index: {}]   ;;  %s778_s4 = inlined_call_operand.vmem [shape: f32[1,64], index: 4, kind: input, shape index: {}]   ;;  %s779_s5 = inlined_call_operand.vmem [shape: f32[32,64], index: 5, kind: output, shape index: {0}]   ;;  %s780_s6 = inlined_call_operand.vmem [shape: f32[2,2,64], index: 6, kind: output, shape index: {1}]  }
   0x1 LB: > { %s680_s22 = sadd.s32 4294967295, %s636_s21   ;;  %p520_p0 = scmp.ge.s32.totalorder %s636_s21, 1  ;;  %s636_s21 = sphi %s674_s21, %s17_s21  }
   0x2   : > { %p216_p1 = scmp.lt.s32.totalorder %s636_s21, 3 }
   0x4   : > { %p217_p2 = pnand %p520_p0, %p216_p1 }
   0x5   : > { %s521_s23 = sshll.u32 (!%p217_p2), %s680_s22, 1  ;;  %v306_v0 = vld [vmem:[%s777_s3] sm:$0xff] (!%p217_p2)  ;;  %v307_v1 = vld [vmem:[%s777_s3 + $0x8] sm:$0xff] (!%p217_p2)  ;;  %v308_v2 = vld [vmem:[%s777_s3 + $0x10] sm:$0xff] (!%p217_p2)  ;;  %vm290_vm0 = vcmask (!%p217_p2), 1040384   ;;  %s638_s11 = smov (!%p217_p2), 64  }
   0x6   : > { %220 = sbr.rel (%p217_p2) target bundleno = 378 (0x17a), region = 40  ;;  %p251_p3 = scmp.lt.s32.totalorder (!%p217_p2), %s521_s23, 3  ;;  %v584_v3 = vpack.c.bf16 (!%p217_p2), %v307_v1, %v306_v0  ;;  %v309_v4 = vld [vmem:[%s777_s3 + $0x18] sm:$0xff] (!%p217_p2)  ;;  %v310_v6 = vld [vmem:[%s777_s3 + $0x20] sm:$0xff] (!%p217_p2)  ;;  %v311_v7 = vld [vmem:[%s777_s3 + $0x28] sm:$0xff] (!%p217_p2)  ;;  %vm303_vm1 = vcmask (!%p217_p2), 523264  }
   0x7   : > { %v588_v5 = vpack.c.bf16 (!%p217_p2), %v309_v4, %v308_v2  ;;  %v526_v8 = vld [vmem:[%s775_s1] ss:$0 sm:$0xff] (!%p217_p2)  ;;  %v592_v10 = vpack.c.bf16 (!%p217_p2), %v311_v7, %v310_v6  ;;  %v312_v11 = vld [vmem:[%s777_s3 + $0x30] sm:$0xff] (!%p217_p2)  ;;  %v313_v14 = vld [vmem:[%s777_s3 + $0x38] sm:$0xff] (!%p217_p2)  ;;  %p262_p4 = scmp.lt.s32.totalorder (!%p217_p2), %s680_s22, 1  ;;  %vm427_vm2 = vcmask (!%p217_p2), 517120  }
   0x8   : > { %585 = vmatprep.subr.bf16.mxu0 (!%p217_p2), %v584_v3  ;;  %v527_v9 = vld [vmem:[%s776_s2] ss:$0 sm:$0xff] (!%p217_p2)  ;;  %v596_v19 = vpack.c.bf16 (!%p217_p2), %v313_v14, %v312_v11  ;;  %v315_v21 = vld [vmem:[%s777_s3 + $0x48] sm:$0xff] (!%p217_p2)  ;;  %v316_v28 = vld [vmem:[%s777_s3 + $0x50] sm:$0xff] (!%p217_p2) }
   0x9   : > { %587 = vmatpush3.bf16.msra.mxu0 (!%p217_p2), %v584_v3  ;;  %v314_v20 = vld [vmem:[%s777_s3 + $0x40] sm:$0xff] (!%p217_p2)  ;;  %v317_v29 = vld [vmem:[%s777_s3 + $0x58] sm:$0xff] (!%p217_p2)  ;;  %v319_v33 = vld [vmem:[%s777_s3 + $0x68] sm:$0xff] (!%p217_p2) }
   0xa   : > { %589 = vmatprep.subr.bf16.mxu0 (!%p217_p2), %v588_v5  ;;  %v600_v26 = vpack.c.bf16 (!%p217_p2), %v315_v21, %v314_v20  ;;  %v604_v31 = vpack.c.bf16 (!%p217_p2), %v317_v29, %v316_v28  ;;  %v318_v32 = vld [vmem:[%s777_s3 + $0x60] sm:$0xff] (!%p217_p2)  ;;  %v320_v35 = vld [vmem:[%s777_s3 + $0x70] sm:$0xff] (!%p217_p2)  ;;  %v321_v36 = vld [vmem:[%s777_s3 + $0x78] sm:$0xff] (!%p217_p2) }
   0xb   : > { %v608_v34 = vpack.c.bf16 (!%p217_p2), %v319_v33, %v318_v32  ;;  %v612_v37 = vpack.c.bf16 (!%p217_p2), %v321_v36, %v320_v35  ;;  %v528_v44 = vld [vmem:[%s778_s4] ss:$0 sm:$0xff] (!%p217_p2) }
   0xd   : > { %s782_s23 = smov (!%p251_p3, %s521_s23), 3  ;;  %591 = vmatpush3.bf16.msra.mxu0 %v588_v5  ;;  %s784_s22 = smov (!%p262_p4, %s680_s22), 1 }
   0xe   : > { %s522_s12 = sshll.u32 %s782_s23, 3  ;;  %593 = vmatprep.subr.bf16.mxu0 %v592_v10  ;;  %s525_s23 = sshll.u32 %s784_s22, 1 }
   0xf   : > { %s254_s17 = scalar_lea.vmem %s774_s0, %s522_s12  ;;  %s260_s28 = scalar_lea.vmem %s779_s5, %s522_s12 }
  0x10   : > { %v266_v12 = vld [vmem:[%s254_s17] sm:$0xff]  ;;  %v267_v13 = vld [vmem:[%s254_s17 + $0x8] sm:$0xff]  ;;  %s265_s30 = scalar_lea.vmem %s780_s6, %s525_s23 }
  0x11   : > { %v275_v15 = vmul.f32 %v526_v8, %v266_v12  ;;  %v276_v16 = vmul.f32 %v526_v8, %v267_v13  ;;  %595 = vmatpush3.bf16.msra.mxu0 %v592_v10 }
  0x12   : > { %597 = vmatprep.subr.bf16.mxu0 %v596_v19 }
  0x13   : > { %v284_v17 = vadd.f32 %v527_v9, %v275_v15  ;;  %v285_v18 = vadd.f32 %v527_v9, %v276_v16 }
  0x15   : > { %v286_v22 = vmax.f32 %v284_v17, 0.0  ;;  %v287_v23 = vmax.f32 %v285_v18, 0.0  ;;  %599 = vmatpush3.bf16.msra.mxu0 %v596_v19 }
  0x16   : > { %601 = vmatprep.subr.bf16.mxu0 %v600_v26 }
  0x17   : > { %v292_v24 = vrot.slane %v287_v23, 7  ;;  %v625_v25 = vpack.i.bf16 %v287_v23, %v286_v22  ;;  %v291_v27 = vrot.slane %v286_v22, 7 }
  0x19   : > { %626 = vrot.lane.b32.xlu0 %v625_v25, %s638_s11  ;;  %v293_v30 = vsel %vm290_vm0, %v291_v27, %v292_v24  ;;  %603 = vmatpush3.bf16.msra.mxu0 %v600_v26  ;;  %v296_v39 = vsel %vm290_vm0, 0.0, %v291_v27 }
  0x1a   : > { %605 = vmatprep.subr.bf16.mxu0 %v604_v31 }
  0x1d   : > { %607 = vmatpush3.bf16.msra.mxu0 %v604_v31 }
  0x1e   : > { %609 = vmatprep.subr.bf16.mxu0 %v608_v34 }
  0x21   : > { %611 = vmatpush3.bf16.msra.mxu0 %v608_v34 }
  0x22   : > { %613 = vmatprep.subr.bf16.mxu0 %v612_v37 }
  0x25   : > { %615 = vmatpush3.bf16.msra.mxu0 %v612_v37 }
  0x8b   : > { %v627_v38 = vpop.permute.xlu0 %626 }
  0x8c   : > { %v629_v40 = vunpack.i.h.bf16 %v627_v38  ;;  %v628_v41 = vunpack.i.l.bf16 %v627_v38 }
  0x8e   : > { %v304_v42 = vsel %vm303_vm1, %v296_v39, %v628_v41  ;;  %v305_v43 = vsel %vm303_vm1, %v293_v30, %v629_v40 }
  0x8f   : > { %581 = vmatprep.mubr.f32.mxu0 %v304_v42 }
  0x90   : > { %582 = vmatmul.mubr.f32.vlgmr.msra.gmra.mrb[0].mxu0 %v305_v43 }
 0x163   : > { %v583_v45 = vpop.f32.mrb[0].mxu0 }
 0x164   : > { %v401_v46 = vadd.f32 %v583_v45, %v528_v44  ;;  %v395_v47 = vpop.f32.mrb[1].mxu0 }
 0x165   : > { %v396_v48 = vadd.f32 %v528_v44, %v395_v47 }
 0x166   : > { %v407_v49 = vsel %vm303_vm1, %v401_v46, 0.0  ;;  %v416_v50 = vmul.f32 %v401_v46, %v401_v46  ;;  %405 = vst.msk [vmem:[%s260_s28 + $0x8] sm:$0xff] %vm303_vm1, %v401_v46 }
 0x167   : > { %404 = vst.msk [vmem:[%s260_s28] sm:$0xff] %vm303_vm1, %v396_v48  ;;  %v406_v51 = vsel %vm303_vm1, %v396_v48, 0.0  ;;  %v415_v52 = vmul.f32 %v396_v48, %v396_v48 }
 0x168   : > { %v418_v53 = vsel %vm303_vm1, %v416_v50, 0.0  ;;  %v408_v54 = vadd.f32 %v407_v49, %v406_v51 }
 0x169   : > { %v417_v55 = vsel %vm303_vm1, %v415_v52, 0.0 }
 0x16a   : > { %v409_v56 = vrot.slane %v408_v54, 4  ;;  %v419_v57 = vadd.f32 %v418_v53, %v417_v55 }
 0x16c   : > { %v410_v58 = vadd.f32 %v409_v56, %v408_v54  ;;  %v420_v59 = vrot.slane %v419_v57, 4 }
 0x16e   : > { %v411_v60 = vrot.slane %v410_v58, 2  ;;  %v421_v61 = vadd.f32 %v420_v59, %v419_v57 }
 0x170   : > { %v412_v62 = vadd.f32 %v411_v60, %v410_v58  ;;  %v422_v63 = vrot.slane %v421_v61, 2 }
 0x172   : > { %v413_v0 = vrot.slane %v412_v62, 1  ;;  %v423_v1 = vadd.f32 %v422_v63, %v421_v61 }
 0x174   : > { %v424_v2 = vrot.slane %v423_v1, 1  ;;  %v414_v3 = vadd.f32 %v413_v0, %v412_v62 }
 0x176   : > { %v425_v4 = vadd.f32 %v424_v2, %v423_v1 }
 0x178   : > { %v426_v5 = vsel %vm290_vm0, %v414_v3, %v425_v4 }
 0x179   : > { %428 = vst.msk [vmem:[%s265_s30] sm:$0x3] %vm427_vm2, %v426_v5 }
 0x17a PF: > { %s17_s21 = sadd.s32 1, %s636_s21  }
 0x17b   : > { %p14_p5 = scmp.ge.s32.totalorder %s17_s21, 4  }
 0x17d   :  { %16 = sbr.rel (!%p14_p5) target bundleno = 1 (0x1), region = 82 }

// kernel: residual_block.6
= control target key start
LH: loop header
LB: loop body
LE: loop exit
PB: predicated region body
PF: predicated region fallthrough
CT: control target
= control target key end

     0   :  { %s577_s21 = smov 0   ;;  %s634_s0 = inlined_call_operand.vmem [shape: f32[32,64], index: 0, kind: input, shape index: {}]   ;;  %s635_s1 = inlined_call_operand.vmem [shape: f32[1,64], index: 1, kind: input, shape index: {}]   ;;  %s636_s2 = inlined_call_operand.vmem [shape: f32[1,64], index: 2, kind: input, shape index: {}]   ;;  %s637_s3 = inlined_call_operand.vmem [shape: f32[64,128], index: 3, kind: input, shape index: {}]   ;;  %s638_s4 = inlined_call_operand.vmem [shape: f32[1,128], index: 4, kind: input, shape index: {}]   ;;  %s639_s5 = inlined_call_operand.vmem [shape: f32[32,128], index: 5, kind: output, shape index: {0}]   ;;  %s640_s6 = inlined_call_operand.vmem [shape: f32[4,2,128], index: 6, kind: output, shape index: {1}]  }
   0x1 LB: > { %s466_s22 = sadd.s32 4294967295, %s537_s21   ;;  %p470_p0 = scmp.ge.s32.totalorder %s537_s21, 1  ;;  %s537_s21 = sphi %s577_s21, %s17_s21  }
   0x2   : > { %p214_p1 = scmp.lt.s32.totalorder %s537_s21, 5 }
   0x4   : > { %p215_p2 = pnand %p470_p0, %p214_p1 }
   0x5   : > { %v276_v0 = vld [vmem:[%s637_s3] sm:$0xff] (!%p215_p2)  ;;  %v277_v1 = vld [vmem:[%s637_s3 + $0x8] sm:$0xff] (!%p215_p2)  ;;  %v278_v2 = vld [vmem:[%s637_s3 + $0x10] sm:$0xff] (!%p215_p2)  ;;  %v539_v3 = vmov (!%p215_p2), 0.0|0.0   ;;  %vm540_vm0 = vmmov (!%p215_p2), 0   ;;  %v541_v6 = vmov (!%p215_p2), 0.0  }
   0x6   : > { %218 = sbr.rel (%p215_p2) target bundleno = 253 (0xfd), region = 40  ;;  %508 = vmatprep.subr.bf16.mxu0 (!%p215_p2), %v539_v3  ;;  %v509_v4 = vpack.c.bf16 (!%p215_p2), %v277_v1, %v276_v0  ;;  %v279_v5 = vld [vmem:[%s637_s3 + $0x18] sm:$0xff] (!%p215_p2)  ;;  %505 = vmatprep.mubr.msk.f32.mxu0 (!%p215_p2), %vm540_vm0, %v541_v6  ;;  %p246_p3 = scmp.lt.s32.totalorder (!%p215_p2), %s466_s22, 3  ;;  %v280_v8 = vld [vmem:[%s637_s3 + $0x20] sm:$0xff] (!%p215_p2)  ;;  %v281_v9 = vld [vmem:[%s637_s3 + $0x28] sm:$0xff] (!%p215_p2)  ;;  %vm291_vm1 = vcmask (!%p215_p2), 523264  }
   0x7   : > { %v512_v7 = vpack.c.bf16 (!%p215_p2), %v279_v5, %v278_v2  ;;  %v474_v10 = vld [vmem:[%s635_s1] ss:$0 sm:$0xff] (!%p215_p2)  ;;  %v515_v11 = vpack.c.bf16 (!%p215_p2), %v281_v9, %v280_v8  ;;  %v282_v14 = vld [vmem:[%s637_s3 + $0x30] sm:$0xff] (!%p215_p2)  ;;  %v283_v15 = vld [vmem:[%s637_s3 + $0x38] sm:$0xff] (!%p215_p2)  ;;  %vm379_vm2 = vcmask (!%p215_p2), 1040384  }
   0x8   : > { %510 = vmatpush3.bf16.msra.mxu0 (!%p215_p2), %v509_v4  ;;  %v475_v13 = vld [vmem:[%s636_s2] ss:$0 sm:$0xff] (!%p215_p2)  ;;  %v518_v18 = vpack.c.bf16 (!%p215_p2), %v283_v15, %v282_v14 }
   0x9   : > { %511 = vmatprep.subr.bf16.mxu0 (!%p215_p2), %v539_v3  ;;  %v476_v20 = vld [vmem:[%s638_s4] ss:$0 sm:$0xff] (!%p215_p2) }
   0xc   : > { %513 = vmatpush3.bf16.msra.mxu0 (!%p215_p2), %v512_v7 }
   0xd   : > { %s642_s22 = smov (!%p246_p3, %s466_s22), 3  ;;  %514 = vmatprep.subr.bf16.mxu0 %v539_v3 }
   0xe   : > { %s471_s11 = sshll.u32 %s642_s22, 3  ;;  %s473_s30 = sshll.u32 %s642_s22, 1 }
   0xf   : > { %s249_s16 = scalar_lea.vmem %s634_s0, %s471_s11  ;;  %s253_s29 = scalar_lea.vmem %s639_s5, %s471_s11 }
  0x10   : > { %v258_v12 = vld [vmem:[%s249_s16] sm:$0xff]  ;;  %516 = vmatpush3.bf16.msra.mxu0 %v515_v11  ;;  %s257_s9 = scalar_lea.vmem %s640_s6, %s473_s30 }
  0x11   : > { %v266_v16 = vmul.f32 %v474_v10, %v258_v12  ;;  %517 = vmatprep.subr.bf16.mxu0 %v539_v3 }
  0x13   : > { %v274_v17 = vadd.f32 %v475_v13, %v266_v16 }
  0x14   : > { %519 = vmatpush3.bf16.msra.mxu0 %v518_v18 }
  0x15   : > { %v275_v19 = vmax.f32 %v274_v17, 0.0 }
  0x17   : > { %506 = vmatmul.mubr.msk.f32.vlgmr.msra.gmra.mrb[0].mxu0 %vm291_vm1, %v275_v19 }
  0xea   : > { %v361_v21 = vpop.f32.mrb[0].mxu0 }
  0xeb   : > { %v362_v22 = vadd.f32 %v476_v20, %v361_v21  ;;  %v507_v23 = vpop.f32.mrb[1].mxu0 }
  0xed   : > { %365 = vst [vmem:[%s253_s29] sm:$0xff] %v362_v22  ;;  %v366_v24 = vrot.slane %v362_v22, 4  ;;  %v372_v25 = vmul.f32 %v362_v22, %v362_v22 }
  0xef   : > { %v367_v26 = vadd.f32 %v366_v24, %v362_v22  ;;  %v373_v27 = vrot.slane %v372_v25, 4 }
  0xf1   : > { %v368_v28 = vrot.slane %v367_v26, 2  ;;  %v374_v29 = vadd.f32 %v373_v27, %v372_v25 }
  0xf3   : > { %v369_v30 = vadd.f32 %v368_v28, %v367_v26  ;;  %v375_v31 = vrot.slane %v374_v29, 2 }
  0xf5   : > { %v370_v32 = vrot.slane %v369_v30, 1  ;;  %v376_v33 = vadd.f32 %v375_v31, %v374_v29 }
  0xf7   : > { %v377_v34 = vrot.slane %v376_v33, 1  ;;  %v371_v35 = vadd.f32 %v370_v32, %v369_v30 }
  0xf9   : > { %v378_v36 = vadd.f32 %v377_v34, %v376_v33 }
  0xfb   : > { %v380_v37 = vsel %vm379_vm2, %v371_v35, %v378_v36 }
  0xfc   : > { %381 = vst [vmem:[%s257_s9] sm:$0x3] %v380_v37 }
  0xfd PF: > { %s17_s21 = sadd.s32 1, %s537_s21  }
  0xfe   : > { %p14_p4 = scmp.ge.s32.totalorder %s17_s21, 6  }
 0x100   :  { %16 = sbr.rel (!%p14_p4) target bundleno = 1 (0x1), region = 82 }

// kernel: residual_block.7
= control target key start
LH: loop header
LB: loop body
LE: loop exit
PB: predicated region body
PF: predicated region fallthrough
CT: control target
= control target key end

     0   :  { %s320_s15 = smov 0   ;;  %s364_s0 = inlined_call_operand.vmem [shape: f32[32,128], index: 0, kind: input, shape index: {}]   ;;  %s365_s1 = inlined_call_operand.vmem [shape: f32[32,128], index: 1, kind: input, shape index: {}]   ;;  %s366_s2 = inlined_call_operand.vmem [shape: f32[1,128], index: 2, kind: input, shape index: {}]   ;;  %s367_s3 = inlined_call_operand.vmem [shape: f32[1,128], index: 3, kind: input, shape index: {}]   ;;  %s368_s4 = inlined_call_operand.vmem [shape: f32[32,128], index: 4, kind: output, shape index: {}]  }
   0x1 LB: > { %s296_s16 = sadd.s32 4294967295, %s322_s15   ;;  %p300_p0 = scmp.ge.s32.totalorder %s322_s15, 1  ;;  %s322_s15 = sphi %s320_s15, %s14_s15  }
   0x2   : > { %p170_p1 = scmp.lt.s32.totalorder %s322_s15, 5 }
   0x4   : > { %p171_p2 = pnand %p300_p0, %p170_p1 }
   0x5   : > { %p198_p3 = scmp.lt.s32.totalorder (!%p171_p2), %s296_s16, 3  ;;  %v304_v0 = vld [vmem:[%s366_s2] ss:$0 sm:$0xff] (!%p171_p2) }
   0x6   : > { %174 = sbr.rel (%p171_p2) target bundleno = 26 (0x1a), region = 36  ;;  %v305_v2 = vld [vmem:[%s367_s3] ss:$0 sm:$0xff] (!%p171_p2) }
   0xd   : > { %s370_s16 = smov (!%p198_p3, %s296_s16), 3 }
   0xe   : > { %s301_s17 = sshll.u32 %s370_s16, 3 }
   0xf   : > { %s205_s22 = scalar_lea.vmem %s365_s1, %s301_s17  ;;  %s201_s27 = scalar_lea.vmem %s364_s0, %s301_s17 }
  0x10   : > { %v211_v1 = vld [vmem:[%s205_s22] sm:$0xff]  ;;  %s209_s30 = scalar_lea.vmem %s368_s4, %s301_s17 }
  0x11   : > { %v219_v3 = vmul.f32 %v304_v0, %v211_v1  ;;  %v210_v5 = vld [vmem:[%s201_s27] sm:$0xff] }
  0x13   : > { %v227_v4 = vadd.f32 %v305_v2, %v219_v3 }
  0x15   : > { %v228_v6 = vmax.f32 %v227_v4, 0.0 }
  0x17   : > { %v229_v7 = vadd.f32 %v228_v6, %v210_v5 }
  0x19   : > { %230 = vst [vmem:[%s209_s30] sm:$0xff] %v229_v7 }
  0x1a PF: > { %s14_s15 = sadd.s32 1, %s322_s15  }
  0x1b   : > { %p11_p4 = scmp.ge.s32.totalorder %s14_s15, 6  }
  0x1d   :  { %13 = sbr.rel (!%p11_p4) target bundleno = 1 (0x1), region = 69 }

</bundles_post_ra>
